<compile_context>
chip_gen: v7x
topology: tpu7x:2x2x1
jax: 0.10.0
libtpu: 0.0.40
codegen_flags: <defaults>
</compile_context>

<pallas_src>
import functools
import math

import jax
import jax.numpy as jnp
from jax.experimental import pallas as pl
from jax.experimental.pallas import tpu as pltpu


def _embed_kernel(idx_ref, lut_ref, out_ref, *, scale: float, fold_scale: bool):
    """One-hot-matmul gather for one tile of tokens.

    idx_ref: (TT, 1) int32    token ids for this tile
    lut_ref: (V, Dp)          full embedding table, VMEM resident (1 buffer)
    out_ref: (TT, Dp)         lut[idx] * sqrt(d_model)
    """
    tt = out_ref.shape[0]
    vocab = lut_ref.shape[0]
    idx = idx_ref[...]                                         # (TT, 1)
    col = jax.lax.broadcasted_iota(jnp.int32, (tt, vocab), 1)  # (TT, V)
    hit = idx == col
    if fold_scale:
        # sqrt(d_model) folded into the selected one-hot constant: the MXU
        # result already carries the scale -> no VPU epilogue multiply.
        onehot = jnp.where(hit, scale, 0.0).astype(lut_ref.dtype)
        acc = jnp.dot(onehot, lut_ref[...], preferred_element_type=jnp.float32)
    else:
        # Narrow table dtype (e.g. bf16): keep the scale in f32 so it is not
        # rounded into the one-hot; apply it on the f32 accumulator.
        onehot = jnp.where(hit, 1.0, 0.0).astype(lut_ref.dtype)
        acc = scale * jnp.dot(
            onehot, lut_ref[...], preferred_element_type=jnp.float32
        )
    out_ref[...] = acc.astype(out_ref.dtype)


def embeddings_forward(x, lut, *, token_tile: int = 256):
    """x: (B, S) integer indices; lut: (vocab, d_model) table.

    Returns (B, S, d_model) = lut[x] * sqrt(d_model), in lut's dtype.
    """
    B, S = x.shape
    vocab, d_model = lut.shape
    n_tok = B * S
    out_dtype = lut.dtype
    scale = float(math.sqrt(d_model))

    # Pad d_model to a lane multiple so output stores are unmasked lane-dense.
    d_pad = pl.cdiv(d_model, 128) * 128
    lut_p = lut if d_pad == d_model else jnp.pad(
        lut, ((0, 0), (0, d_pad - d_model)))

    # Clamp the token tile for tiny workloads (don't burn MXU rows on padding);
    # keep it a multiple of 8 for the (sublane, lane) block constraint.
    tt = max(8, min(token_tile, pl.cdiv(n_tok, 8) * 8))
    n_pad = pl.cdiv(n_tok, tt) * tt

    idx_flat = x.reshape(n_tok).astype(jnp.int32)
    if n_pad != n_tok:
        idx_flat = jnp.pad(idx_flat, (0, n_pad - n_tok))
    idx_2d = idx_flat.reshape(n_pad, 1)  # 2-D so the kernel sees a 2-D block

    grid = (n_pad // tt,)

    lut_item = jnp.dtype(lut.dtype).itemsize
    out_item = jnp.dtype(out_dtype).itemsize
    # VMEM budget: single-buffered table + double-buffered idx/out tiles +
    # in-kernel one-hot temporary. x2 headroom, clamped for v7x (64 MiB phys).
    vmem_bytes = (
        vocab * d_pad * lut_item              # resident table (no double buffer)
        + 2 * tt * 128 * 4                    # idx tiles (lane-padded layout)
        + 2 * tt * d_pad * out_item           # out tiles (pipelined)
        + tt * max(vocab, 128) * 4            # one-hot temporary
    )
    vmem_limit = int(min(max(2 * vmem_bytes, 16 * 1024 * 1024),
                         48 * 1024 * 1024))

    cost = pl.CostEstimate(
        flops=2 * n_pad * vocab * d_pad,
        transcendentals=0,
        bytes_accessed=(n_pad * 4
                        + vocab * d_pad * lut_item
                        + n_pad * d_pad * out_item),
    )

    kernel = functools.partial(
        _embed_kernel,
        scale=scale,
        fold_scale=(jnp.dtype(lut.dtype) == jnp.dtype(jnp.float32)),
    )

    out = pl.pallas_call(
        kernel,
        out_shape=jax.ShapeDtypeStruct((n_pad, d_pad), out_dtype),
        grid_spec=pltpu.PrefetchScalarGridSpec(
            num_scalar_prefetch=0,
            grid=grid,
            in_specs=[
                # Index tile: blocked over flattened tokens.
                pl.BlockSpec((tt, 1), lambda i: (i, 0)),
                # Full embedding table, VMEM-resident, not pipelined
                # (constant index -> no point double-buffering it).
                pl.BlockSpec(memory_space=pltpu.MemorySpace.VMEM),
            ],
            out_specs=pl.BlockSpec((tt, d_pad), lambda i: (i, 0)),
        ),
        compiler_params=pltpu.CompilerParams(
            dimension_semantics=("parallel",),
            vmem_limit_bytes=vmem_limit,
        ),
        cost_estimate=cost,
    )(idx_2d, lut_p)

    out = out[:n_tok, :d_model]
    return out.reshape(B, S, d_model)


if __name__ == "__main__":
    # Small deterministic config consistent with the module's forward.
    B, S = 2, 8
    vocab, d_model = 32, 128

    key = jax.random.PRNGKey(0)
    k_lut, k_idx = jax.random.split(key)

    # nn.Embedding default init is N(0, 1).
    lut = jax.random.normal(k_lut, (vocab, d_model), dtype=jnp.float32)
    x = jax.random.randint(k_idx, (B, S), 0, vocab, dtype=jnp.int32)

    out = embeddings_forward(x, lut)
    out = jax.block_until_ready(out)

    # Reference check in plain JAX.
    ref = lut[x] * math.sqrt(d_model)
    assert out.shape == (B, S, d_model)
    assert out.dtype == lut.dtype
    assert jnp.allclose(out, ref, atol=1e-5, rtol=1e-5)

    print("KERNEL_OK")
</pallas_src>

<mosaic_0001>
module attributes {stable_mosaic.version = 11 : i64} {
  func.func @_embed_kernel(%arg0: i32, %arg1: memref<16x1xi32, #tpu.memory_space<vmem>>, %arg2: memref<32x128xf32, #tpu.memory_space<vmem>>, %arg3: memref<16x128xf32, #tpu.memory_space<vmem>>) attributes {dimension_semantics = [#tpu.dimension_semantics<parallel>], iteration_bounds = array<i64: 1>, scalar_prefetch = 0 : i64, scratch_operands = 0 : i64, tpu.core_type = #tpu.core_type<tc>, window_params = [{transform_indices = @transform_0, window_bounds = array<i64: 16, 1>}, {pipeline_mode = #tpu.pipeline_mode<synchronous>, transform_indices = @transform_1, window_bounds = array<i64: 32, 128>}, {transform_indices = @transform_2, window_bounds = array<i64: 16, 128>}]} {
    %c0 = arith.constant 0 : index
    %c0_0 = arith.constant 0 : index
    %0 = vector.load %arg1[%c0, %c0_0] : memref<16x1xi32, #tpu.memory_space<vmem>>, vector<16x1xi32>
    %1 = tpu.iota {dimensions = array<i32: 1>} : vector<16x32xi32>
    %2 = vector.broadcast %0 : vector<16x1xi32> to vector<16x32xi32>
    %3 = arith.cmpi eq, %2, %1 : vector<16x32xi32>
    %cst = arith.constant 11.3137083 : f32
    %cst_1 = arith.constant 0.000000e+00 : f32
    %4 = vector.broadcast %cst : f32 to vector<16x32xf32>
    %5 = vector.broadcast %cst_1 : f32 to vector<16x32xf32>
    %6 = arith.select %3, %4, %5 : vector<16x32xi1>, vector<16x32xf32>
    %c0_2 = arith.constant 0 : index
    %c0_3 = arith.constant 0 : index
    %7 = vector.load %arg2[%c0_2, %c0_3] : memref<32x128xf32, #tpu.memory_space<vmem>>, vector<32x128xf32>
    %cst_4 = arith.constant dense<0.000000e+00> : vector<16x128xf32>
    %8 = tpu.matmul %6, %7, %cst_4 {dimension_numbers = #tpu.dot_dimension_numbers<[1], [0], [0], [1], [0, 0, 1, 1], [], []>} : vector<16x32xf32>, vector<32x128xf32>, vector<16x128xf32> -> vector<16x128xf32>
    %c0_5 = arith.constant 0 : index
    %c0_6 = arith.constant 0 : index
    %9 = vector.load %arg3[%c0_5, %c0_6] : memref<16x128xf32, #tpu.memory_space<vmem>>, vector<16x128xf32>
    tpu.vector_store %arg3[%c0_5, %c0_6], %8 {strides = array<i32>} : memref<16x128xf32, #tpu.memory_space<vmem>>, vector<16x128xf32>,
    return
  }
  func.func @transform_0(%arg0: i32) -> (i32, i32) {
    %c0_i32 = arith.constant 0 : i32
    %c0_i32_0 = arith.constant 0 : i32
    return %arg0, %c0_i32 : i32, i32
  }
  func.func @transform_1(%arg0: i32) -> (i32, i32) {
    %c0_i32 = arith.constant 0 : i32
    %c0_i32_0 = arith.constant 0 : i32
    %c0_i32_1 = arith.constant 0 : i32
    return %c0_i32, %c0_i32_0 : i32, i32
  }
  func.func @transform_2(%arg0: i32) -> (i32, i32) {
    %c0_i32 = arith.constant 0 : i32
    %c0_i32_0 = arith.constant 0 : i32
    return %arg0, %c0_i32 : i32, i32
  }
}

</mosaic_0001>

<bundles_post_ra>
// kernel: tpu_custom_call.1
= control target key start
LH: loop header
LB: loop body
LE: loop exit
PB: predicated region body
PF: predicated region fallthrough
CT: control target
= control target key end

     0   :  { %7 = vsyncpa [#allocation3], 0  ;;  %s284_s0 = inlined_call_operand.vmem [shape: s32[16,1], index: 0, kind: input, shape index: {}]   ;;  %s285_s1 = inlined_call_operand.hbm [shape: f32[32,128], index: 1, kind: input, shape index: {}]   ;;  %s286_s2 = inlined_call_operand.hbm [shape: f32[16,128], index: 2, kind: output, shape index: {}]  }
   0x1   :  { %8 = vsyncpa [#allocation4], 0  ;;  %s227_s9 = smov [#allocation2]   ;;  %s179_s13 = scalar_lea.hbm %s285_s1, 512 }
   0x2   :  { %s16_s10 = sshll.u32 %s227_s9, 4  ;;  %p180_p0 = scmp.ne.s32.totalorder %s285_s1, %s179_s13  ;;  %s17_s10 = int_to_ptr.vmem [resolvable:$true] %s16_s10 }
   0x3   :  { %p183_p1 = scmp.lt.u32.totalorder %s179_s13, %s285_s1 }
   0x5   :  { %p185_p2 = pnand %p183_p1, %p180_p0 }
   0x7   :  { %188 = shalt.err (!%p185_p2)
}
   0x8   :  { %s189_s18 = scalar_lea.vmem %s17_s10, 512  ;;  %p194_p4 = scmp.lt.s32.totalorder %s17_s10, %s17_s10 }
   0x9   :  { %p190_p3 = scmp.ne.s32.totalorder %s17_s10, %s189_s18  ;;  %p195_p5 = scmp.lt.s32.totalorder %s189_s18, %s189_s18 }
   0xb   :  { %p196_p6 = por %p195_p5, %p194_p4 }
   0xd   :  { %p197_p7 = pnand %p196_p6, %p190_p3 }
   0xf   :  { %200 = shalt.err (!%p197_p7)
}
  0x10   :  { %s228_s19 = smov 128   ;;  %s229_s20 = smov 8  }
  0x11   :  { %22 = dma.hbm_to_vmem [thread:$0]  %s285_s1, 512, %s17_s10, [#allocation3], %s228_s19, %s228_s19, %s229_s20  }
  0x12   :  { %223 = dma.done.wait [#allocation3], 512  }
  0x13   :  { %224 = vsyncadd [#allocation3], 4294966784  ;;  %v230_v0 = vmov 0   ;;  %v26_v1 = vld [vmem:[%s284_s0] sm:$0xff]  ;;  %v41_v3 = vld [vmem:[#allocation2 + $0x8] sm:$0xff]  ;;  %v28_v9 = vlaneseq  ;;  %vm44_vm0 = vcmask 261120  }
  0x14   :  { %178 = vset.pattern.permute.xlu0 %v230_v0  ;;  %v40_v2 = vld [vmem:[#allocation2] sm:$0xff]  ;;  %v42_v4 = vld [vmem:[#allocation2 + $0x10] sm:$0xff]  ;;  %v43_v5 = vld [vmem:[#allocation2 + $0x18] sm:$0xff]  ;;  %v231_v12 = vmov 0.0  }
  0x15   :  { %31 = vperm.xlu0 %178, %v26_v1   ;;  %v27_v6 = vld [vmem:[%s284_s0 + $0x8] sm:$0xff]  ;;  %v164_v7 = vpack.c.bf16 %v41_v3, %v40_v2  ;;  %v168_v8 = vpack.c.bf16 %v43_v5, %v42_v4  ;;  %v29_v10 = vand.u32 127, %v28_v9  ;;  %s232_s0 = smov [#allocation5]  }
  0x16   :  { %s133_s1 = sshll.u32 %s232_s0, 4  ;;  %s134_s1 = int_to_ptr.vmem [resolvable:$true] %s133_s1 }
  0x17   :  { %165 = vmatprep.subr.bf16.mxu0 %v164_v7  ;;  %s201_s27 = scalar_lea.vmem %s134_s1, 256  ;;  %p206_p9 = scmp.lt.s32.totalorder %s134_s1, %s134_s1 }
  0x18   :  { %167 = vmatpush3.bf16.msra.mxu0 %v164_v7  ;;  %p202_p8 = scmp.ne.s32.totalorder %s134_s1, %s201_s27  ;;  %p207_p10 = scmp.lt.s32.totalorder %s201_s27, %s201_s27 }
  0x19   :  { %34 = vperm.xlu0 %178, %v27_v6   ;;  %169 = vmatprep.subr.bf16.mxu0 %v168_v8 }
  0x1a   :  { %p208_p11 = por %p207_p10, %p206_p9 }
  0x1c   :  { %171 = vmatpush3.bf16.msra.mxu0 %v168_v8  ;;  %p209_p12 = pnand %p208_p11, %p202_p8 }
  0x94   :  { %v32_v11 = vpop.permute.xlu0 %31 }
  0x95   :  { %vm36_vm1 = vcmp.eq.s32.totalorder %v32_v11, %v29_v10 }
  0x96   :  { %v38_v13 = vsel %vm36_vm1, 11.313708, %v231_v12 }
  0x97   :  { %161 = vmatprep.mubr.msk.f32.mxu0 %vm44_vm0, %v38_v13 }
  0x98   :  { %v35_v14 = vpop.permute.xlu0 %34 }
  0x99   :  { %vm37_vm2 = vcmp.eq.s32.totalorder %v35_v14, %v29_v10 }
  0x9a   :  { %v39_v15 = vsel %vm37_vm2, 11.313708, %v231_v12 }
  0x9b   :  { %162 = vmatmul.mubr.msk.f32.vlgmr.msra.gmra.mrb[0].mxu0 %vm44_vm0, %v39_v15 }
 0x16e   :  { %v163_v16 = vpop.f32.mrb[0].mxu0 }
 0x16f   :  { %127 = vst [vmem:[#allocation5 + $0x8] sm:$0xff] %v163_v16  ;;  %v117_v17 = vpop.f32.mrb[1].mxu0 }
 0x170   :  { %126 = vst [vmem:[#allocation5] sm:$0xff] %v117_v17 }
 0x171   :  { %212 = shalt.err (!%p209_p12)
}
 0x172   :  { %s213_s30 = scalar_lea.hbm %s286_s2, 256 }
 0x173   :  { %p214_p13 = scmp.ne.s32.totalorder %s286_s2, %s213_s30  ;;  %p217_p0 = scmp.lt.u32.totalorder %s213_s30, %s286_s2 }
 0x175   :  { %p219_p1 = pnand %p217_p0, %p214_p13 }
 0x177   :  { %222 = shalt.err (!%p219_p1)
}
 0x178   :  { %139 = dma.vmem_to_hbm [thread:$0]  %s134_s1, 256, %s286_s2, [#allocation4], %s228_s19, %s228_s19, %s229_s20  }
 0x179   :  { %225 = dma.done.wait [#allocation4], 256  }
 0x17a   :  { %226 = vsyncadd [#allocation4], 4294967040 }
 0x17b   :  { %143 = vsyncpa [#allocation3], 1 }
 0x17c   :  { %144 = vsyncpa [#allocation4], 1 }

</bundles_post_ra>
